<compile_context>
chip_gen: v7x
topology: tpu7x:2x2x1
jax: 0.10.0
libtpu: 0.0.40
codegen_flags: <defaults>
</compile_context>

<pallas_src>
import jax
import jax.numpy as jnp
from jax.experimental import pallas as pl
from jax.experimental.pallas import tpu as pltpu


def _poly_kernel(coef_ref, x_ref, o_ref):
    # coef_ref: (3,) f32 in SMEM -> scalar reads.
    c0 = coef_ref[0]
    c1 = coef_ref[1]
    c2 = coef_ref[2]
    x = x_ref[...].astype(jnp.float32)
    # Horner form: c0 + x*(c1 + c2*x)  (one fewer multiply, f32 accumulation).
    o_ref[...] = (c0 + x * (c1 + c2 * x)).astype(o_ref.dtype)


def act_poly_param_forward(x, c0, c1, c2, *, target_block_bytes=2 * 1024 * 1024):
    """Apply c0 + c1*x + c2*x^2 elementwise via a Pallas TPU kernel.

    x: any shape (e.g. NCHW). Returns same shape/dtype.
    """
    orig_shape = x.shape
    dtype = x.dtype
    n = x.size
    itemsize = jnp.dtype(dtype).itemsize

    # Pick the widest lane-dense column count (multiple of 128) dividing n.
    cols = 128
    for c in (1024, 512, 256, 128):
        if n % c == 0:
            cols = c
            break

    flat = x.reshape(-1)
    pad = (-n) % cols
    if pad:
        # Ragged case only: pad the small remainder (one small copy).
        flat = jnp.pad(flat, (0, pad))
    rows = (n + pad) // cols
    slab = flat.reshape(rows, cols)  # zero-copy reshape when pad == 0

    # Block rows: ~target_block_bytes per block, multiple of 32 sublanes
    # (covers f32/bf16/int8 packing), capped at the full row extent.
    tile_rows = max(32, (target_block_bytes // (cols * itemsize)) // 32 * 32)
    if tile_rows >= rows:
        tile_rows = rows  # full-extent block is always legal
    grid = (pl.cdiv(rows, tile_rows),)  # Pallas masks the final partial block

    coefs = jnp.asarray([c0, c1, c2], dtype=jnp.float32)

    out = pl.pallas_call(
        _poly_kernel,
        out_shape=jax.ShapeDtypeStruct((rows, cols), dtype),
        grid_spec=pltpu.PrefetchScalarGridSpec(
            num_scalar_prefetch=0,
            grid=grid,
            in_specs=[
                pl.BlockSpec(memory_space=pltpu.SMEM),              # coefficients
                pl.BlockSpec((tile_rows, cols), lambda i: (i, 0)),  # x tile
            ],
            out_specs=pl.BlockSpec((tile_rows, cols), lambda i: (i, 0)),
        ),
        compiler_params=pltpu.CompilerParams(
            dimension_semantics=("parallel",),
        ),
    )(coefs, slab)

    if pad:
        out = out.reshape(-1)[:n]
    return out.reshape(orig_shape)


if __name__ == "__main__":
    # Deterministic parameters matching the module's __init__.
    c0 = 0.1992
    c1 = 0.5002
    c2 = 0.1997

    key = jax.random.PRNGKey(0)

    # Small NCHW input consistent with the module (in_features is unused in forward).
    x = jax.random.normal(key, (2, 4, 16, 16), dtype=jnp.float32)
    y = jax.block_until_ready(act_poly_param_forward(x, c0, c1, c2))
    y_ref = c0 + c1 * x + c2 * x * x
    assert y.shape == x.shape and y.dtype == x.dtype
    assert jnp.allclose(y, y_ref, atol=1e-6, rtol=1e-6)

    # Extra check: ragged size + multi-step grid with a partial final block.
    x2 = jax.random.normal(jax.random.PRNGKey(1), (3, 5, 24, 24), dtype=jnp.float32)
    y2 = jax.block_until_ready(
        act_poly_param_forward(x2, c0, c1, c2, target_block_bytes=32 * 128 * 4)
    )
    y2_ref = c0 + c1 * x2 + c2 * x2 * x2
    assert y2.shape == x2.shape and y2.dtype == x2.dtype
    assert jnp.allclose(y2, y2_ref, atol=1e-6, rtol=1e-6)

    print("KERNEL_OK")
</pallas_src>

<mosaic_0001>
module attributes {stable_mosaic.version = 11 : i64} {
  func.func @_poly_kernel(%arg0: i32, %arg1: memref<3xf32, #tpu.memory_space<smem>>, %arg2: memref<2x1024xf32, #tpu.memory_space<vmem>>, %arg3: memref<2x1024xf32, #tpu.memory_space<vmem>>) attributes {dimension_semantics = [#tpu.dimension_semantics<parallel>], iteration_bounds = array<i64: 1>, scalar_prefetch = 0 : i64, scratch_operands = 0 : i64, tpu.core_type = #tpu.core_type<tc>, window_params = [{transform_indices = @transform_0, window_bounds = array<i64: 3>}, {transform_indices = @transform_1, window_bounds = array<i64: 2, 1024>}, {transform_indices = @transform_2, window_bounds = array<i64: 2, 1024>}]} {
    %c0 = arith.constant 0 : index
    %0 = memref.load %arg1[%c0] : memref<3xf32, #tpu.memory_space<smem>>
    %c1 = arith.constant 1 : index
    %1 = memref.load %arg1[%c1] : memref<3xf32, #tpu.memory_space<smem>>
    %c2 = arith.constant 2 : index
    %2 = memref.load %arg1[%c2] : memref<3xf32, #tpu.memory_space<smem>>
    %c0_0 = arith.constant 0 : index
    %c0_1 = arith.constant 0 : index
    %3 = vector.load %arg2[%c0_0, %c0_1] : memref<2x1024xf32, #tpu.memory_space<vmem>>, vector<2x1024xf32>
    %4 = vector.broadcast %2 : f32 to vector<2x1024xf32>
    %5 = arith.mulf %4, %3 : vector<2x1024xf32>
    %6 = vector.broadcast %1 : f32 to vector<2x1024xf32>
    %7 = arith.addf %6, %5 : vector<2x1024xf32>
    %8 = arith.mulf %3, %7 : vector<2x1024xf32>
    %9 = vector.broadcast %0 : f32 to vector<2x1024xf32>
    %10 = arith.addf %9, %8 : vector<2x1024xf32>
    %c0_2 = arith.constant 0 : index
    %c0_3 = arith.constant 0 : index
    %11 = vector.load %arg3[%c0_2, %c0_3] : memref<2x1024xf32, #tpu.memory_space<vmem>>, vector<2x1024xf32>
    tpu.vector_store %arg3[%c0_2, %c0_3], %10 {strides = array<i32>} : memref<2x1024xf32, #tpu.memory_space<vmem>>, vector<2x1024xf32>,
    return
  }
  func.func @transform_0(%arg0: i32) -> i32 {
    %c0_i32 = arith.constant 0 : i32
    %c0_i32_0 = arith.constant 0 : i32
    return %c0_i32 : i32
  }
  func.func @transform_1(%arg0: i32) -> (i32, i32) {
    %c0_i32 = arith.constant 0 : i32
    %c0_i32_0 = arith.constant 0 : i32
    return %arg0, %c0_i32 : i32, i32
  }
  func.func @transform_2(%arg0: i32) -> (i32, i32) {
    %c0_i32 = arith.constant 0 : i32
    %c0_i32_0 = arith.constant 0 : i32
    return %arg0, %c0_i32 : i32, i32
  }
}

</mosaic_0001>

<bundles_post_ra>
// kernel: tpu_custom_call.1
= control target key start
LH: loop header
LB: loop body
LE: loop exit
PB: predicated region body
PF: predicated region fallthrough
CT: control target
= control target key end

     0   :  { %7 = vsyncpa [#allocation5], 0  ;;  %s188_s0 = inlined_call_operand.hbm [shape: f32[3], index: 0, kind: input, shape index: {}]   ;;  %s189_s1 = inlined_call_operand.hbm [shape: f32[2,1024], index: 1, kind: input, shape index: {}]   ;;  %s190_s2 = inlined_call_operand.hbm [shape: f32[2,1024], index: 2, kind: output, shape index: {}]  }
   0x1   :  { %8 = vsyncpa [#allocation3], 0 }
   0x2   :  { %9 = vsyncpa [#allocation4], 0  ;;  %s74_s11 = scalar_lea.hbm %s188_s0, 16 }
   0x3   :  { %p75_p0 = scmp.ne.s32.totalorder %s188_s0, %s74_s11  ;;  %p78_p1 = scmp.lt.u32.totalorder %s74_s11, %s188_s0 }
   0x5   :  { %p80_p2 = pnand %p78_p1, %p75_p0 }
   0x7   :  { %83 = shalt.err (!%p80_p2)
}
   0x8   :  { %s134_s16 = smov [#allocation2]   ;;  %s135_s19 = smov [#allocation6]  }
   0x9   :  { %17 = dma.hbm_to_smem %s188_s0, 16, %s134_s16, [#allocation5]  }
   0xa   :  { %s24_s20 = sshll.u32 %s135_s19, 4  ;;  %s84_s23 = scalar_lea.hbm %s189_s1, 256  ;;  %s25_s20 = int_to_ptr.vmem [resolvable:$true] %s24_s20 }
   0xb   :  { %p85_p3 = scmp.ne.s32.totalorder %s189_s1, %s84_s23  ;;  %p88_p4 = scmp.lt.u32.totalorder %s84_s23, %s189_s1 }
   0xd   :  { %p90_p5 = pnand %p88_p4, %p85_p3 }
   0xf   :  { %93 = shalt.err (!%p90_p5)
}
  0x10   :  { %s94_s28 = scalar_lea.vmem %s25_s20, 256  ;;  %p99_p7 = scmp.lt.s32.totalorder %s25_s20, %s25_s20 }
  0x11   :  { %p95_p6 = scmp.ne.s32.totalorder %s25_s20, %s94_s28  ;;  %p100_p8 = scmp.lt.s32.totalorder %s94_s28, %s94_s28 }
  0x13   :  { %p101_p9 = por %p100_p8, %p99_p7 }
  0x15   :  { %p102_p10 = pnand %p101_p9, %p95_p6 }
  0x17   :  { %105 = shalt.err (!%p102_p10)
}
  0x18   :  { %27 = dma.hbm_to_vmem [thread:$0]  %s189_s1, 256, %s25_s20, [#allocation3]  }
  0x19   :  { %128 = dma.done.wait [#allocation5], 16  }
  0x1a   :  { %129 = vsyncadd [#allocation5], 4294967280 }
  0x1b   :  { %130 = dma.done.wait [#allocation3], 256  }
  0x1c   :  { %131 = vsyncadd [#allocation3], 4294967040 }
  0x1d   :  { %34 = sfence }
  0x1e   :  { %s69_s30 = sld [smem:[#allocation2 + $0x1]]  ;;  %s70_s3 = sld [smem:[#allocation2 + $0x2]]  ;;  %v38_v0 = vld [vmem:[#allocation6] sm:$0xff]  ;;  %v39_v1 = vld [vmem:[#allocation6 + $0x8] sm:$0xff] }
  0x1f   :  { %s35_s4 = sld [smem:[#allocation2]]  ;;  %s136_s5 = smov [#allocation7]  }
  0x20   :  { %s59_s6 = sshll.u32 %s136_s5, 4  ;;  %s60_s6 = int_to_ptr.vmem [resolvable:$true] %s59_s6 }
  0x21   :  { %s106_s1 = scalar_lea.vmem %s60_s6, 256  ;;  %p111_p12 = scmp.lt.s32.totalorder %s60_s6, %s60_s6 }
  0x22   :  { %p107_p11 = scmp.ne.s32.totalorder %s60_s6, %s106_s1  ;;  %p112_p13 = scmp.lt.s32.totalorder %s106_s1, %s106_s1 }
  0x24   :  { %v40_v2 = vstv %s70_s3  ;;  %v43_v3 = vstv %s69_s30  ;;  %p113_p0 = por %p112_p13, %p111_p12 }
  0x25   :  { %v41_v4 = vmul.f32 %v40_v2, %v38_v0  ;;  %v42_v5 = vmul.f32 %v40_v2, %v39_v1  ;;  %v48_v8 = vstv %s35_s4 }
  0x26   :  { %p114_p1 = pnand %p113_p0, %p107_p11 }
  0x27   :  { %v44_v6 = vadd.f32 %v43_v3, %v41_v4  ;;  %v45_v7 = vadd.f32 %v43_v3, %v42_v5 }
  0x29   :  { %v46_v9 = vmul.f32 %v44_v6, %v38_v0  ;;  %v47_v10 = vmul.f32 %v45_v7, %v39_v1 }
  0x2b   :  { %v49_v11 = vadd.f32 %v48_v8, %v46_v9  ;;  %v50_v12 = vadd.f32 %v48_v8, %v47_v10 }
  0x2d   :  { %51 = vst [vmem:[#allocation7] sm:$0xff] %v49_v11  ;;  %52 = vst [vmem:[#allocation7 + $0x8] sm:$0xff] %v50_v12 }
  0x2e   :  { %117 = shalt.err (!%p114_p1)
}
  0x2f   :  { %s118_s9 = scalar_lea.hbm %s190_s2, 256 }
  0x30   :  { %p119_p2 = scmp.ne.s32.totalorder %s190_s2, %s118_s9  ;;  %p122_p3 = scmp.lt.u32.totalorder %s118_s9, %s190_s2 }
  0x32   :  { %p124_p4 = pnand %p122_p3, %p119_p2 }
  0x34   :  { %127 = shalt.err (!%p124_p4)
}
  0x35   :  { %62 = dma.vmem_to_hbm [thread:$0]  %s60_s6, 256, %s190_s2, [#allocation4]  }
  0x36   :  { %132 = dma.done.wait [#allocation4], 256  }
  0x37   :  { %133 = vsyncadd [#allocation4], 4294967040 }
  0x38   :  { %66 = vsyncpa [#allocation3], 1 }
  0x39   :  { %67 = vsyncpa [#allocation4], 1 }
  0x3a   :  { %68 = vsyncpa [#allocation5], 1 }

</bundles_post_ra>
